<compile_context>
chip_gen: v6e
topology: v6e:2x2x1
jax: 0.10.0
libtpu: 0.0.40
codegen_flags: <defaults>
</compile_context>

<pallas_src>
import jax
import jax.numpy as jnp
import numpy as np
from jax import lax
from jax.experimental import pallas as pl
from jax.experimental.pallas import tpu as pltpu

LEVELS = 2  # AutoRegressive(levels=2): dilations 1, 2 per encoder


# ---------------------------------------------------------------------------
# Kernel
# ---------------------------------------------------------------------------
def _ar_kernel(w_ref, b_ref, t_ref, p_ref, o_ref):
    # t_ref / p_ref / o_ref: (L, W) tiles for one batch element.
    t = t_ref[...].astype(jnp.float32)
    p = p_ref[...].astype(jnp.float32)
    L, W = t.shape

    # ---- masks hoisted once (reused by every tap of every conv) -------------
    hidx = lax.broadcasted_iota(jnp.int32, (L, W), 0)
    widx = lax.broadcasted_iota(jnp.int32, (L, W), 1)
    mask_w = {+1: widx >= 1, -1: widx < W - 1}
    mask_h = {}
    for lvl in range(LEVELS):
        d = 2 ** lvl
        mask_h[+d] = hidx >= d        # causal shift down by d
        mask_h[-d] = hidx < L - d     # anti-causal shift up by d

    def shift_h(x, dh):
        # out[h, w] = x[h - dh, w], zero outside bounds.
        y = pltpu.roll(x, shift=dh % L, axis=0)
        return jnp.where(mask_h[dh], y, 0.0)

    def shift_w(x, dw):
        # out[h, w] = x[h, w - dw], zero outside bounds.
        y = pltpu.roll(x, shift=dw % W, axis=1)
        return jnp.where(mask_w[dw], y, 0.0)

    def row_taps(xh, w_l, w_c, w_r):
        # width taps at dw = +1, 0, -1 (kw = 0, 1, 2)
        return w_l * shift_w(xh, +1) + w_c * xh + w_r * shift_w(xh, -1)

    def conv_relu(x, idx, d, anti):
        # One CausalConv2d (kernel (2,3), dilation (d,1)) + ReLU, same (L,W).
        #   anti=False: causal along L  (output h uses rows h-d, h)
        #   anti=True : anti-causal      (output h uses rows h, h+d)
        dh0 = -d if anti else d
        xh0 = shift_h(x, dh0)  # kh = 0 row, hoisted (kh = 1 row is x itself)
        acc = (row_taps(xh0, w_ref[idx, 0], w_ref[idx, 1], w_ref[idx, 2])
               + row_taps(x, w_ref[idx, 3], w_ref[idx, 4], w_ref[idx, 5])
               + b_ref[idx])
        return jnp.maximum(acc, 0.0)

    # temperature encoder: causal convs, dilations 1, 2 (param rows 0, 1)
    te = t
    for lvl in range(LEVELS):
        te = conv_relu(te, lvl, 2 ** lvl, anti=False)

    # permeability encoder: flip/conv/flip == anti-causal convs (param rows 2, 3)
    pe = p
    for lvl in range(LEVELS):
        pe = conv_relu(pe, LEVELS + lvl, 2 ** lvl, anti=True)

    # prediction row h (valid for h < L-1): (tanh(te[h] + pe[h+1]) + 1) / 2.
    # Store the full aligned (L, W) tile; row L-1 is discarded by the wrapper.
    pe_up = shift_h(pe, -1)  # reuses mask_h[-1]
    o_ref[...] = ((jnp.tanh(te + pe_up) + 1.0) * 0.5).astype(o_ref.dtype)


# ---------------------------------------------------------------------------
# Wrapper
# ---------------------------------------------------------------------------
def auto_regressive_forward(temperature, permeability, weights, biases):
    """temperature/permeability: (B, 1, L, W). Returns (B, 1, L-1, W).

    weights: (2*LEVELS, 6) f32  — rows 0..1: temp_enc convs, rows 2..3: perm_enc
             convs; each row is the (2,3) conv kernel flattened row-major.
    biases : (2*LEVELS,) f32.
    """
    B, C, L, W = temperature.shape
    assert C == 1
    # roll-based shifts require |dh| < L and |dw| < W
    assert L > 2 ** (LEVELS - 1) and L >= 2, "length too small for the dilations"
    assert W >= 2, "width too small for the (.,3) kernel"

    t = temperature.reshape(B, L, W)
    p = permeability.reshape(B, L, W)
    out_dtype = temperature.dtype

    grid_spec = pltpu.PrefetchScalarGridSpec(
        num_scalar_prefetch=0,
        grid=(B,),
        in_specs=[
            pl.BlockSpec(memory_space=pltpu.MemorySpace.SMEM),   # weights
            pl.BlockSpec(memory_space=pltpu.MemorySpace.SMEM),   # biases
            pl.BlockSpec((None, L, W), lambda b: (b, 0, 0)),     # temperature
            pl.BlockSpec((None, L, W), lambda b: (b, 0, 0)),     # permeability
        ],
        out_specs=pl.BlockSpec((None, L, W), lambda b: (b, 0, 0)),
    )

    out = pl.pallas_call(
        _ar_kernel,
        out_shape=jax.ShapeDtypeStruct((B, L, W), out_dtype),
        grid_spec=grid_spec,
        compiler_params=pltpu.CompilerParams(
            dimension_semantics=("parallel",),   # megacore over batch on v7x
        ),
    )(weights, biases, t, p)

    # Full-L aligned store in-kernel; the :-1 length slice happens here.
    return out[:, : L - 1, :].reshape(B, 1, L - 1, W)


# ---------------------------------------------------------------------------
# Pure-JAX reference (mirrors the PyTorch module exactly)
# ---------------------------------------------------------------------------
def _causal_conv2d_ref(x, w23, b, level):
    d = 2 ** level
    pad = d  # (kernel_size_x - 1) * dilation
    y = lax.conv_general_dilated(
        x, w23.reshape(1, 1, 2, 3),
        window_strides=(1, 1),
        padding=((pad, pad), (1, 1)),
        rhs_dilation=(d, 1),
        dimension_numbers=("NCHW", "OIHW", "NCHW"),
    )
    y = jnp.maximum(y + b, 0.0)
    return y[:, :, :-pad, :]


def forward_ref(temperature, permeability, weights, biases):
    t = temperature[:, :, :-1, :]
    for lvl in range(LEVELS):
        t = _causal_conv2d_ref(t, weights[lvl], biases[lvl], lvl)
    p = jnp.flip(permeability, axis=2)
    for lvl in range(LEVELS):
        p = _causal_conv2d_ref(p, weights[LEVELS + lvl], biases[LEVELS + lvl], lvl)
    p = jnp.flip(p, axis=2)
    return (jnp.tanh(t + p[:, :, 1:, :]) + 1.0) / 2.0


# ---------------------------------------------------------------------------
if __name__ == "__main__":
    key = jax.random.PRNGKey(0)
    k_t, k_p, k_w, k_b = jax.random.split(key, 4)

    B, L, W = 2, 16, 16
    temperature = jax.random.uniform(k_t, (B, 1, L, W), jnp.float32)
    permeability = jax.random.uniform(k_p, (B, 1, L, W), jnp.float32)

    # Deterministic parameter init, mimicking nn.Conv2d default U(-1/sqrt(fan_in), .)
    n_convs = 2 * LEVELS
    bound = 1.0 / np.sqrt(1 * 2 * 3)
    weights = jax.random.uniform(k_w, (n_convs, 6), jnp.float32, -bound, bound)
    biases = jax.random.uniform(k_b, (n_convs,), jnp.float32, -bound, bound)

    pred = auto_regressive_forward(temperature, permeability, weights, biases)
    pred = jax.block_until_ready(pred)

    ref = forward_ref(temperature, permeability, weights, biases)
    ref = jax.block_until_ready(ref)

    assert pred.shape == (B, 1, L - 1, W), pred.shape
    assert np.allclose(np.asarray(pred), np.asarray(ref), atol=1e-5, rtol=1e-5), (
        float(np.max(np.abs(np.asarray(pred) - np.asarray(ref)))))
    print("KERNEL_OK")
</pallas_src>

<mosaic_0001>
module attributes {stable_mosaic.version = 11 : i64} {
  func.func @_ar_kernel(%arg0: i32, %arg1: memref<4x6xf32, #tpu.memory_space<smem>>, %arg2: memref<4xf32, #tpu.memory_space<smem>>, %arg3: memref<1x16x16xf32, #tpu.memory_space<vmem>>, %arg4: memref<1x16x16xf32, #tpu.memory_space<vmem>>, %arg5: memref<1x16x16xf32, #tpu.memory_space<vmem>>) attributes {dimension_semantics = [#tpu.dimension_semantics<parallel>], iteration_bounds = array<i64: 2>, scalar_prefetch = 0 : i64, scratch_operands = 0 : i64, tpu.core_type = #tpu.core_type<tc>, window_params = [{transform_indices = @transform_0, window_bounds = array<i64: 4, 6>}, {transform_indices = @transform_1, window_bounds = array<i64: 4>}, {transform_indices = @transform_2, window_bounds = array<i64: 1, 16, 16>}, {transform_indices = @transform_3, window_bounds = array<i64: 1, 16, 16>}, {transform_indices = @transform_4, window_bounds = array<i64: 1, 16, 16>}]} {
    %c0 = arith.constant 0 : index
    %c0_0 = arith.constant 0 : index
    %c0_1 = arith.constant 0 : index
    %0 = vector.load %arg3[%c0, %c0_0, %c0_1] : memref<1x16x16xf32, #tpu.memory_space<vmem>>, vector<1x16x16xf32>
    %1 = vector.shape_cast %0 : vector<1x16x16xf32> to vector<16x16xf32>
    %c0_2 = arith.constant 0 : index
    %c0_3 = arith.constant 0 : index
    %c0_4 = arith.constant 0 : index
    %2 = vector.load %arg4[%c0_2, %c0_3, %c0_4] : memref<1x16x16xf32, #tpu.memory_space<vmem>>, vector<1x16x16xf32>
    %3 = vector.shape_cast %2 : vector<1x16x16xf32> to vector<16x16xf32>
    %4 = tpu.iota {dimensions = array<i32: 0>} : vector<16x16xi32>
    %5 = tpu.iota {dimensions = array<i32: 1>} : vector<16x16xi32>
    %c1_i32 = arith.constant 1 : i32
    %6 = vector.broadcast %c1_i32 : i32 to vector<16x16xi32>
    %7 = arith.cmpi sge, %5, %6 : vector<16x16xi32>
    %c15_i32 = arith.constant 15 : i32
    %8 = vector.broadcast %c15_i32 : i32 to vector<16x16xi32>
    %9 = arith.cmpi slt, %5, %8 : vector<16x16xi32>
    %c1_i32_5 = arith.constant 1 : i32
    %10 = vector.broadcast %c1_i32_5 : i32 to vector<16x16xi32>
    %11 = arith.cmpi sge, %4, %10 : vector<16x16xi32>
    %c15_i32_6 = arith.constant 15 : i32
    %12 = vector.broadcast %c15_i32_6 : i32 to vector<16x16xi32>
    %13 = arith.cmpi slt, %4, %12 : vector<16x16xi32>
    %c2_i32 = arith.constant 2 : i32
    %14 = vector.broadcast %c2_i32 : i32 to vector<16x16xi32>
    %15 = arith.cmpi sge, %4, %14 : vector<16x16xi32>
    %c14_i32 = arith.constant 14 : i32
    %16 = vector.broadcast %c14_i32 : i32 to vector<16x16xi32>
    %17 = arith.cmpi slt, %4, %16 : vector<16x16xi32>
    %c1_i32_7 = arith.constant 1 : i32
    %18 = tpu.dynamic_rotate %1 by %c1_i32_7 dim 0 : vector<16x16xf32>, i32 -> vector<16x16xf32>
    %cst = arith.constant 0.000000e+00 : f32
    %19 = vector.broadcast %cst : f32 to vector<16x16xf32>
    %20 = arith.select %11, %18, %19 : vector<16x16xi1>, vector<16x16xf32>
    %c0_8 = arith.constant 0 : index
    %c0_9 = arith.constant 0 : index
    %21 = memref.load %arg1[%c0_8, %c0_9] : memref<4x6xf32, #tpu.memory_space<smem>>
    %c0_10 = arith.constant 0 : index
    %c1 = arith.constant 1 : index
    %22 = memref.load %arg1[%c0_10, %c1] : memref<4x6xf32, #tpu.memory_space<smem>>
    %c0_11 = arith.constant 0 : index
    %c2 = arith.constant 2 : index
    %23 = memref.load %arg1[%c0_11, %c2] : memref<4x6xf32, #tpu.memory_space<smem>>
    %c1_i32_12 = arith.constant 1 : i32
    %24 = tpu.dynamic_rotate %20 by %c1_i32_12 dim 1 : vector<16x16xf32>, i32 -> vector<16x16xf32>
    %cst_13 = arith.constant 0.000000e+00 : f32
    %25 = vector.broadcast %cst_13 : f32 to vector<16x16xf32>
    %26 = arith.select %7, %24, %25 : vector<16x16xi1>, vector<16x16xf32>
    %27 = vector.broadcast %21 : f32 to vector<16x16xf32>
    %28 = arith.mulf %27, %26 : vector<16x16xf32>
    %29 = vector.broadcast %22 : f32 to vector<16x16xf32>
    %30 = arith.mulf %29, %20 : vector<16x16xf32>
    %31 = arith.addf %28, %30 : vector<16x16xf32>
    %c15_i32_14 = arith.constant 15 : i32
    %32 = tpu.dynamic_rotate %20 by %c15_i32_14 dim 1 : vector<16x16xf32>, i32 -> vector<16x16xf32>
    %cst_15 = arith.constant 0.000000e+00 : f32
    %33 = vector.broadcast %cst_15 : f32 to vector<16x16xf32>
    %34 = arith.select %9, %32, %33 : vector<16x16xi1>, vector<16x16xf32>
    %35 = vector.broadcast %23 : f32 to vector<16x16xf32>
    %36 = arith.mulf %35, %34 : vector<16x16xf32>
    %37 = arith.addf %31, %36 : vector<16x16xf32>
    %c0_16 = arith.constant 0 : index
    %c3 = arith.constant 3 : index
    %38 = memref.load %arg1[%c0_16, %c3] : memref<4x6xf32, #tpu.memory_space<smem>>
    %c0_17 = arith.constant 0 : index
    %c4 = arith.constant 4 : index
    %39 = memref.load %arg1[%c0_17, %c4] : memref<4x6xf32, #tpu.memory_space<smem>>
    %c0_18 = arith.constant 0 : index
    %c5 = arith.constant 5 : index
    %40 = memref.load %arg1[%c0_18, %c5] : memref<4x6xf32, #tpu.memory_space<smem>>
    %c1_i32_19 = arith.constant 1 : i32
    %41 = tpu.dynamic_rotate %1 by %c1_i32_19 dim 1 : vector<16x16xf32>, i32 -> vector<16x16xf32>
    %cst_20 = arith.constant 0.000000e+00 : f32
    %42 = vector.broadcast %cst_20 : f32 to vector<16x16xf32>
    %43 = arith.select %7, %41, %42 : vector<16x16xi1>, vector<16x16xf32>
    %44 = vector.broadcast %38 : f32 to vector<16x16xf32>
    %45 = arith.mulf %44, %43 : vector<16x16xf32>
    %46 = vector.broadcast %39 : f32 to vector<16x16xf32>
    %47 = arith.mulf %46, %1 : vector<16x16xf32>
    %48 = arith.addf %45, %47 : vector<16x16xf32>
    %c15_i32_21 = arith.constant 15 : i32
    %49 = tpu.dynamic_rotate %1 by %c15_i32_21 dim 1 : vector<16x16xf32>, i32 -> vector<16x16xf32>
    %cst_22 = arith.constant 0.000000e+00 : f32
    %50 = vector.broadcast %cst_22 : f32 to vector<16x16xf32>
    %51 = arith.select %9, %49, %50 : vector<16x16xi1>, vector<16x16xf32>
    %52 = vector.broadcast %40 : f32 to vector<16x16xf32>
    %53 = arith.mulf %52, %51 : vector<16x16xf32>
    %54 = arith.addf %48, %53 : vector<16x16xf32>
    %55 = arith.addf %37, %54 : vector<16x16xf32>
    %c0_23 = arith.constant 0 : index
    %56 = memref.load %arg2[%c0_23] : memref<4xf32, #tpu.memory_space<smem>>
    %57 = vector.broadcast %56 : f32 to vector<16x16xf32>
    %58 = arith.addf %55, %57 : vector<16x16xf32>
    %cst_24 = arith.constant 0.000000e+00 : f32
    %59 = vector.broadcast %cst_24 : f32 to vector<16x16xf32>
    %60 = arith.maximumf %58, %59 : vector<16x16xf32>
    %c2_i32_25 = arith.constant 2 : i32
    %61 = tpu.dynamic_rotate %60 by %c2_i32_25 dim 0 : vector<16x16xf32>, i32 -> vector<16x16xf32>
    %cst_26 = arith.constant 0.000000e+00 : f32
    %62 = vector.broadcast %cst_26 : f32 to vector<16x16xf32>
    %63 = arith.select %15, %61, %62 : vector<16x16xi1>, vector<16x16xf32>
    %c1_27 = arith.constant 1 : index
    %c0_28 = arith.constant 0 : index
    %64 = memref.load %arg1[%c1_27, %c0_28] : memref<4x6xf32, #tpu.memory_space<smem>>
    %c1_29 = arith.constant 1 : index
    %c1_30 = arith.constant 1 : index
    %65 = memref.load %arg1[%c1_29, %c1_30] : memref<4x6xf32, #tpu.memory_space<smem>>
    %c1_31 = arith.constant 1 : index
    %c2_32 = arith.constant 2 : index
    %66 = memref.load %arg1[%c1_31, %c2_32] : memref<4x6xf32, #tpu.memory_space<smem>>
    %c1_i32_33 = arith.constant 1 : i32
    %67 = tpu.dynamic_rotate %63 by %c1_i32_33 dim 1 : vector<16x16xf32>, i32 -> vector<16x16xf32>
    %cst_34 = arith.constant 0.000000e+00 : f32
    %68 = vector.broadcast %cst_34 : f32 to vector<16x16xf32>
    %69 = arith.select %7, %67, %68 : vector<16x16xi1>, vector<16x16xf32>
    %70 = vector.broadcast %64 : f32 to vector<16x16xf32>
    %71 = arith.mulf %70, %69 : vector<16x16xf32>
    %72 = vector.broadcast %65 : f32 to vector<16x16xf32>
    %73 = arith.mulf %72, %63 : vector<16x16xf32>
    %74 = arith.addf %71, %73 : vector<16x16xf32>
    %c15_i32_35 = arith.constant 15 : i32
    %75 = tpu.dynamic_rotate %63 by %c15_i32_35 dim 1 : vector<16x16xf32>, i32 -> vector<16x16xf32>
    %cst_36 = arith.constant 0.000000e+00 : f32
    %76 = vector.broadcast %cst_36 : f32 to vector<16x16xf32>
    %77 = arith.select %9, %75, %76 : vector<16x16xi1>, vector<16x16xf32>
    %78 = vector.broadcast %66 : f32 to vector<16x16xf32>
    %79 = arith.mulf %78, %77 : vector<16x16xf32>
    %80 = arith.addf %74, %79 : vector<16x16xf32>
    %c1_37 = arith.constant 1 : index
    %c3_38 = arith.constant 3 : index
    %81 = memref.load %arg1[%c1_37, %c3_38] : memref<4x6xf32, #tpu.memory_space<smem>>
    %c1_39 = arith.constant 1 : index
    %c4_40 = arith.constant 4 : index
    %82 = memref.load %arg1[%c1_39, %c4_40] : memref<4x6xf32, #tpu.memory_space<smem>>
    %c1_41 = arith.constant 1 : index
    %c5_42 = arith.constant 5 : index
    %83 = memref.load %arg1[%c1_41, %c5_42] : memref<4x6xf32, #tpu.memory_space<smem>>
    %c1_i32_43 = arith.constant 1 : i32
    %84 = tpu.dynamic_rotate %60 by %c1_i32_43 dim 1 : vector<16x16xf32>, i32 -> vector<16x16xf32>
    %cst_44 = arith.constant 0.000000e+00 : f32
    %85 = vector.broadcast %cst_44 : f32 to vector<16x16xf32>
    %86 = arith.select %7, %84, %85 : vector<16x16xi1>, vector<16x16xf32>
    %87 = vector.broadcast %81 : f32 to vector<16x16xf32>
    %88 = arith.mulf %87, %86 : vector<16x16xf32>
    %89 = vector.broadcast %82 : f32 to vector<16x16xf32>
    %90 = arith.mulf %89, %60 : vector<16x16xf32>
    %91 = arith.addf %88, %90 : vector<16x16xf32>
    %c15_i32_45 = arith.constant 15 : i32
    %92 = tpu.dynamic_rotate %60 by %c15_i32_45 dim 1 : vector<16x16xf32>, i32 -> vector<16x16xf32>
    %cst_46 = arith.constant 0.000000e+00 : f32
    %93 = vector.broadcast %cst_46 : f32 to vector<16x16xf32>
    %94 = arith.select %9, %92, %93 : vector<16x16xi1>, vector<16x16xf32>
    %95 = vector.broadcast %83 : f32 to vector<16x16xf32>
    %96 = arith.mulf %95, %94 : vector<16x16xf32>
    %97 = arith.addf %91, %96 : vector<16x16xf32>
    %98 = arith.addf %80, %97 : vector<16x16xf32>
    %c1_47 = arith.constant 1 : index
    %99 = memref.load %arg2[%c1_47] : memref<4xf32, #tpu.memory_space<smem>>
    %100 = vector.broadcast %99 : f32 to vector<16x16xf32>
    %101 = arith.addf %98, %100 : vector<16x16xf32>
    %cst_48 = arith.constant 0.000000e+00 : f32
    %102 = vector.broadcast %cst_48 : f32 to vector<16x16xf32>
    %103 = arith.maximumf %101, %102 : vector<16x16xf32>
    %c15_i32_49 = arith.constant 15 : i32
    %104 = tpu.dynamic_rotate %3 by %c15_i32_49 dim 0 : vector<16x16xf32>, i32 -> vector<16x16xf32>
    %cst_50 = arith.constant 0.000000e+00 : f32
    %105 = vector.broadcast %cst_50 : f32 to vector<16x16xf32>
    %106 = arith.select %13, %104, %105 : vector<16x16xi1>, vector<16x16xf32>
    %c2_51 = arith.constant 2 : index
    %c0_52 = arith.constant 0 : index
    %107 = memref.load %arg1[%c2_51, %c0_52] : memref<4x6xf32, #tpu.memory_space<smem>>
    %c2_53 = arith.constant 2 : index
    %c1_54 = arith.constant 1 : index
    %108 = memref.load %arg1[%c2_53, %c1_54] : memref<4x6xf32, #tpu.memory_space<smem>>
    %c2_55 = arith.constant 2 : index
    %c2_56 = arith.constant 2 : index
    %109 = memref.load %arg1[%c2_55, %c2_56] : memref<4x6xf32, #tpu.memory_space<smem>>
    %c1_i32_57 = arith.constant 1 : i32
    %110 = tpu.dynamic_rotate %106 by %c1_i32_57 dim 1 : vector<16x16xf32>, i32 -> vector<16x16xf32>
    %cst_58 = arith.constant 0.000000e+00 : f32
    %111 = vector.broadcast %cst_58 : f32 to vector<16x16xf32>
    %112 = arith.select %7, %110, %111 : vector<16x16xi1>, vector<16x16xf32>
    %113 = vector.broadcast %107 : f32 to vector<16x16xf32>
    %114 = arith.mulf %113, %112 : vector<16x16xf32>
    %115 = vector.broadcast %108 : f32 to vector<16x16xf32>
    %116 = arith.mulf %115, %106 : vector<16x16xf32>
    %117 = arith.addf %114, %116 : vector<16x16xf32>
    %c15_i32_59 = arith.constant 15 : i32
    %118 = tpu.dynamic_rotate %106 by %c15_i32_59 dim 1 : vector<16x16xf32>, i32 -> vector<16x16xf32>
    %cst_60 = arith.constant 0.000000e+00 : f32
    %119 = vector.broadcast %cst_60 : f32 to vector<16x16xf32>
    %120 = arith.select %9, %118, %119 : vector<16x16xi1>, vector<16x16xf32>
    %121 = vector.broadcast %109 : f32 to vector<16x16xf32>
    %122 = arith.mulf %121, %120 : vector<16x16xf32>
    %123 = arith.addf %117, %122 : vector<16x16xf32>
    %c2_61 = arith.constant 2 : index
    %c3_62 = arith.constant 3 : index
    %124 = memref.load %arg1[%c2_61, %c3_62] : memref<4x6xf32, #tpu.memory_space<smem>>
    %c2_63 = arith.constant 2 : index
    %c4_64 = arith.constant 4 : index
    %125 = memref.load %arg1[%c2_63, %c4_64] : memref<4x6xf32, #tpu.memory_space<smem>>
    %c2_65 = arith.constant 2 : index
    %c5_66 = arith.constant 5 : index
    %126 = memref.load %arg1[%c2_65, %c5_66] : memref<4x6xf32, #tpu.memory_space<smem>>
    %c1_i32_67 = arith.constant 1 : i32
    %127 = tpu.dynamic_rotate %3 by %c1_i32_67 dim 1 : vector<16x16xf32>, i32 -> vector<16x16xf32>
    %cst_68 = arith.constant 0.000000e+00 : f32
    %128 = vector.broadcast %cst_68 : f32 to vector<16x16xf32>
    %129 = arith.select %7, %127, %128 : vector<16x16xi1>, vector<16x16xf32>
    %130 = vector.broadcast %124 : f32 to vector<16x16xf32>
    %131 = arith.mulf %130, %129 : vector<16x16xf32>
    %132 = vector.broadcast %125 : f32 to vector<16x16xf32>
    %133 = arith.mulf %132, %3 : vector<16x16xf32>
    %134 = arith.addf %131, %133 : vector<16x16xf32>
    %c15_i32_69 = arith.constant 15 : i32
    %135 = tpu.dynamic_rotate %3 by %c15_i32_69 dim 1 : vector<16x16xf32>, i32 -> vector<16x16xf32>
    %cst_70 = arith.constant 0.000000e+00 : f32
    %136 = vector.broadcast %cst_70 : f32 to vector<16x16xf32>
    %137 = arith.select %9, %135, %136 : vector<16x16xi1>, vector<16x16xf32>
    %138 = vector.broadcast %126 : f32 to vector<16x16xf32>
    %139 = arith.mulf %138, %137 : vector<16x16xf32>
    %140 = arith.addf %134, %139 : vector<16x16xf32>
    %141 = arith.addf %123, %140 : vector<16x16xf32>
    %c2_71 = arith.constant 2 : index
    %142 = memref.load %arg2[%c2_71] : memref<4xf32, #tpu.memory_space<smem>>
    %143 = vector.broadcast %142 : f32 to vector<16x16xf32>
    %144 = arith.addf %141, %143 : vector<16x16xf32>
    %cst_72 = arith.constant 0.000000e+00 : f32
    %145 = vector.broadcast %cst_72 : f32 to vector<16x16xf32>
    %146 = arith.maximumf %144, %145 : vector<16x16xf32>
    %c14_i32_73 = arith.constant 14 : i32
    %147 = tpu.dynamic_rotate %146 by %c14_i32_73 dim 0 : vector<16x16xf32>, i32 -> vector<16x16xf32>
    %cst_74 = arith.constant 0.000000e+00 : f32
    %148 = vector.broadcast %cst_74 : f32 to vector<16x16xf32>
    %149 = arith.select %17, %147, %148 : vector<16x16xi1>, vector<16x16xf32>
    %c3_75 = arith.constant 3 : index
    %c0_76 = arith.constant 0 : index
    %150 = memref.load %arg1[%c3_75, %c0_76] : memref<4x6xf32, #tpu.memory_space<smem>>
    %c3_77 = arith.constant 3 : index
    %c1_78 = arith.constant 1 : index
    %151 = memref.load %arg1[%c3_77, %c1_78] : memref<4x6xf32, #tpu.memory_space<smem>>
    %c3_79 = arith.constant 3 : index
    %c2_80 = arith.constant 2 : index
    %152 = memref.load %arg1[%c3_79, %c2_80] : memref<4x6xf32, #tpu.memory_space<smem>>
    %c1_i32_81 = arith.constant 1 : i32
    %153 = tpu.dynamic_rotate %149 by %c1_i32_81 dim 1 : vector<16x16xf32>, i32 -> vector<16x16xf32>
    %cst_82 = arith.constant 0.000000e+00 : f32
    %154 = vector.broadcast %cst_82 : f32 to vector<16x16xf32>
    %155 = arith.select %7, %153, %154 : vector<16x16xi1>, vector<16x16xf32>
    %156 = vector.broadcast %150 : f32 to vector<16x16xf32>
    %157 = arith.mulf %156, %155 : vector<16x16xf32>
    %158 = vector.broadcast %151 : f32 to vector<16x16xf32>
    %159 = arith.mulf %158, %149 : vector<16x16xf32>
    %160 = arith.addf %157, %159 : vector<16x16xf32>
    %c15_i32_83 = arith.constant 15 : i32
    %161 = tpu.dynamic_rotate %149 by %c15_i32_83 dim 1 : vector<16x16xf32>, i32 -> vector<16x16xf32>
    %cst_84 = arith.constant 0.000000e+00 : f32
    %162 = vector.broadcast %cst_84 : f32 to vector<16x16xf32>
    %163 = arith.select %9, %161, %162 : vector<16x16xi1>, vector<16x16xf32>
    %164 = vector.broadcast %152 : f32 to vector<16x16xf32>
    %165 = arith.mulf %164, %163 : vector<16x16xf32>
    %166 = arith.addf %160, %165 : vector<16x16xf32>
    %c3_85 = arith.constant 3 : index
    %c3_86 = arith.constant 3 : index
    %167 = memref.load %arg1[%c3_85, %c3_86] : memref<4x6xf32, #tpu.memory_space<smem>>
    %c3_87 = arith.constant 3 : index
    %c4_88 = arith.constant 4 : index
    %168 = memref.load %arg1[%c3_87, %c4_88] : memref<4x6xf32, #tpu.memory_space<smem>>
    %c3_89 = arith.constant 3 : index
    %c5_90 = arith.constant 5 : index
    %169 = memref.load %arg1[%c3_89, %c5_90] : memref<4x6xf32, #tpu.memory_space<smem>>
    %c1_i32_91 = arith.constant 1 : i32
    %170 = tpu.dynamic_rotate %146 by %c1_i32_91 dim 1 : vector<16x16xf32>, i32 -> vector<16x16xf32>
    %cst_92 = arith.constant 0.000000e+00 : f32
    %171 = vector.broadcast %cst_92 : f32 to vector<16x16xf32>
    %172 = arith.select %7, %170, %171 : vector<16x16xi1>, vector<16x16xf32>
    %173 = vector.broadcast %167 : f32 to vector<16x16xf32>
    %174 = arith.mulf %173, %172 : vector<16x16xf32>
    %175 = vector.broadcast %168 : f32 to vector<16x16xf32>
    %176 = arith.mulf %175, %146 : vector<16x16xf32>
    %177 = arith.addf %174, %176 : vector<16x16xf32>
    %c15_i32_93 = arith.constant 15 : i32
    %178 = tpu.dynamic_rotate %146 by %c15_i32_93 dim 1 : vector<16x16xf32>, i32 -> vector<16x16xf32>
    %cst_94 = arith.constant 0.000000e+00 : f32
    %179 = vector.broadcast %cst_94 : f32 to vector<16x16xf32>
    %180 = arith.select %9, %178, %179 : vector<16x16xi1>, vector<16x16xf32>
    %181 = vector.broadcast %169 : f32 to vector<16x16xf32>
    %182 = arith.mulf %181, %180 : vector<16x16xf32>
    %183 = arith.addf %177, %182 : vector<16x16xf32>
    %184 = arith.addf %166, %183 : vector<16x16xf32>
    %c3_95 = arith.constant 3 : index
    %185 = memref.load %arg2[%c3_95] : memref<4xf32, #tpu.memory_space<smem>>
    %186 = vector.broadcast %185 : f32 to vector<16x16xf32>
    %187 = arith.addf %184, %186 : vector<16x16xf32>
    %cst_96 = arith.constant 0.000000e+00 : f32
    %188 = vector.broadcast %cst_96 : f32 to vector<16x16xf32>
    %189 = arith.maximumf %187, %188 : vector<16x16xf32>
    %c15_i32_97 = arith.constant 15 : i32
    %190 = tpu.dynamic_rotate %189 by %c15_i32_97 dim 0 : vector<16x16xf32>, i32 -> vector<16x16xf32>
    %cst_98 = arith.constant 0.000000e+00 : f32
    %191 = vector.broadcast %cst_98 : f32 to vector<16x16xf32>
    %192 = arith.select %13, %190, %191 : vector<16x16xi1>, vector<16x16xf32>
    %193 = arith.addf %103, %192 : vector<16x16xf32>
    %194 = math.tanh %193 : vector<16x16xf32>
    %cst_99 = arith.constant 1.000000e+00 : f32
    %195 = vector.broadcast %cst_99 : f32 to vector<16x16xf32>
    %196 = arith.addf %194, %195 : vector<16x16xf32>
    %cst_100 = arith.constant 5.000000e-01 : f32
    %197 = vector.broadcast %cst_100 : f32 to vector<16x16xf32>
    %198 = arith.mulf %196, %197 : vector<16x16xf32>
    %c0_101 = arith.constant 0 : index
    %c0_102 = arith.constant 0 : index
    %c0_103 = arith.constant 0 : index
    %199 = vector.load %arg5[%c0_101, %c0_102, %c0_103] : memref<1x16x16xf32, #tpu.memory_space<vmem>>, vector<1x16x16xf32>
    %200 = vector.shape_cast %199 : vector<1x16x16xf32> to vector<16x16xf32>
    %201 = vector.shape_cast %198 : vector<16x16xf32> to vector<1x16x16xf32>
    tpu.vector_store %arg5[%c0_101, %c0_102, %c0_103], %201 {strides = array<i32>} : memref<1x16x16xf32, #tpu.memory_space<vmem>>, vector<1x16x16xf32>,
    return
  }
  func.func @transform_0(%arg0: i32) -> (i32, i32) {
    %c0_i32 = arith.constant 0 : i32
    %c0_i32_0 = arith.constant 0 : i32
    %c0_i32_1 = arith.constant 0 : i32
    return %c0_i32, %c0_i32_0 : i32, i32
  }
  func.func @transform_1(%arg0: i32) -> i32 {
    %c0_i32 = arith.constant 0 : i32
    %c0_i32_0 = arith.constant 0 : i32
    return %c0_i32 : i32
  }
  func.func @transform_2(%arg0: i32) -> (i32, i32, i32) {
    %c0_i32 = arith.constant 0 : i32
    %c0_i32_0 = arith.constant 0 : i32
    %c0_i32_1 = arith.constant 0 : i32
    return %arg0, %c0_i32, %c0_i32_0 : i32, i32, i32
  }
  func.func @transform_3(%arg0: i32) -> (i32, i32, i32) {
    %c0_i32 = arith.constant 0 : i32
    %c0_i32_0 = arith.constant 0 : i32
    %c0_i32_1 = arith.constant 0 : i32
    return %arg0, %c0_i32, %c0_i32_0 : i32, i32, i32
  }
  func.func @transform_4(%arg0: i32) -> (i32, i32, i32) {
    %c0_i32 = arith.constant 0 : i32
    %c0_i32_0 = arith.constant 0 : i32
    %c0_i32_1 = arith.constant 0 : i32
    return %arg0, %c0_i32, %c0_i32_0 : i32, i32, i32
  }
}

</mosaic_0001>

<bundles_post_ra>
// kernel: tpu_custom_call.1
= control target key start
LH: loop header
LB: loop body
LE: loop exit
PB: predicated region body
PF: predicated region fallthrough
CT: control target
= control target key end

     0   :  { %s1847_s0 = inlined_call_operand.hbm [shape: f32[4,6], index: 0, kind: input, shape index: {}]   ;;  %s1848_s1 = inlined_call_operand.vmem [shape: f32[4], index: 1, kind: input, shape index: {}]   ;;  %s1849_s2 = inlined_call_operand.hbm [shape: f32[2,16,16], index: 2, kind: input, shape index: {}]   ;;  %s1850_s3 = inlined_call_operand.hbm [shape: f32[2,16,16], index: 3, kind: input, shape index: {}]   ;;  %s1851_s4 = inlined_call_operand.hbm [shape: f32[2,16,16], index: 4, kind: output, shape index: {}]  }
   0x1   :  { %1855 = sst [smem:[#allocation17_spill]] %s1847_s0 }
   0x2   :  { %9 = vsyncpa [#allocation5], 0 }
   0x3   :  { %10 = vsyncpa [#allocation6], 0 }
   0x4   :  { %11 = vsyncpa [#allocation3], 0 }
   0x5   :  { %13 = vsyncpa [#allocation3 + $0x1], 0 }
   0x6   :  { %14 = vsyncpa [#allocation10], 0 }
   0x7   :  { %16 = vsyncpa [#allocation10 + $0x1], 0 }
   0x8   :  { %17 = vsyncpa [#allocation4], 0 }
   0x9   :  { %19 = vsyncpa [#allocation4 + $0x1], 0  ;;  %s1211_s15 = smov 0   ;;  %s1213_s16 = smov 0  }
   0xa   :  { %s1215_s17 = smov 0   ;;  %s1217_s18 = smov 0  }
   0xb LB: > { %s1232_s19 = sadd.s32 4294967295, %s1172_s18   ;;  %s880_s20 = sadd.s32 4294967294, %s1172_s18   ;;  %s1172_s18 = sphi %s1217_s18, %s1876_s18   ;;  %s1168_s17 = sphi %s1215_s17, %s1875_s17   ;;  %s1164_s16 = sphi %s1213_s16, %s1874_s16   ;;  %s1160_s15 = sphi %s1211_s15, %s1873_s15  }
   0xc   : > { %s1236_s21 = sadd.s32 1, %s1172_s18   ;;  %s74_s22 = sadd.s32 1, %s1168_s17 }
   0xd   : > { %s71_s23 = ssub.s32 %s1172_s18, %s1236_s21  ;;  %p81_p0 = scmp.ne.s32.totalorder %s1168_s17, %s1164_s16 }
   0xe   : > { %p72_p1 = scmp.eq.s32.totalorder %s71_s23, 0  ;;  %p82_p2 = scmp.eq.s32.totalorder %s1172_s18, 0 }
   0xf   : > { %p87_p3 = scmp.ne.s32.totalorder %s1164_s16, %s1160_s15  ;;  %p1852_p4 = scmp.eq.s32.totalorder %s1232_s19, 0 }
  0x10   : > { %s1248_s24 = scalar_select %p72_p1, %s1168_s17, %s74_s22  }
  0x11   : > { %p1250_p5 = por %p82_p2, %p81_p0  ;;  %p1256_p6 = por %p1852_p4, %p87_p3 }
  0x12   : > { %p137_p7 = scmp.eq.s32.totalorder %s1232_s19, 1  ;;  %p143_p8 = scmp.eq.s32.totalorder %s880_s20, 1 }
  0x13   : > { %s1857_s26 = scalar_select %p1256_p6, 1, 0 }
  0x14   : > { %p881_p9 = scmp.ge.s32.totalorder %s1172_s18, 1  ;;  %p150_p10 = scmp.lt.s32.totalorder %s1172_s18, 3 }
  0x15   : > { %p1263_p11 = por %p137_p7, %p81_p0  ;;  %p1267_p12 = por %p143_p8, %p87_p3 }
  0x16   : > { %p1271_p13 = pnand %p881_p9, %p150_p10  ;;  %p965_p4 = scmp.lt.s32.totalorder %s1172_s18, 2 }
  0x17   : > { %s1858_s27 = scalar_select %p1263_p11, 1, 0 }
  0x18   : > { %s1859_s28 = scalar_select %p1267_p12, 1, 0 }
  0x19   : > { %p945_p2 = pneg %p1271_p13  ;;  %s172_s6 = sshll.u32 %s1848_s1, 4  ;;  %s173_s6 = int_to_ptr.vmem [resolvable:$true] %s172_s6 }
  0x1a   : > { %p1861_p0 = scmp.eq.s32.totalorder %s1232_s19, 0  ;;  %p1290_p3 = pnand %p965_p4, %p1250_p5 }
  0x1b   : > { %s1295_s9 = sand.u32 1, %s1168_s17   ;;  %s1174_s10 = smov [#allocation2]  }
  0x1c   : > { %p1284_p7 = pnand %p945_p2, %p1861_p0  ;;  %s1864_s0 = sld [smem:[#allocation17_spill]] }
  0x1d   : > { %s1025_s13 = scalar_lea.vmem %s173_s6, 16  ;;  %p1033_p0 = scmp.lt.s32.totalorder %s173_s6, %s173_s6 }
  0x1e   : > { %p1026_p8 = scmp.ne.s32.totalorder %s173_s6, %s1025_s13  ;;  %p1027_p9 = pneg %p1284_p7 }
  0x1f   : > { %p1034_p4 = scmp.lt.s32.totalorder %s1025_s13, %s1025_s13 }
  0x20   : > { %p1028_p10 = pnand %p1027_p9, %p1026_p8 }
  0x21   : > { %p1035_p5 = por %p1034_p4, %p1033_p0 }
  0x22   : > { %948 = dma.hbm_to_smem (!%p1284_p7), %s1864_s0, 64, %s1174_s10, [#allocation5]  }
  0x23   : > { %p1029_p2 = pneg %p1028_p10 }
  0x25   : > { %p1036_p1 = pnand %p1035_p5, %p1029_p2 }
  0x27   : > { %1039 = shalt.err (!%p1036_p1)
}
  0x28   : > { %s1175_s14 = smov [#allocation7]   ;;  %s885_s20 = sshll.u32 %s1295_s9, 4 }
  0x29   : > { %951 = dma.vmem_to_smem (!%p1284_p7), %s173_s6, 16, %s1175_s14, [#allocation6]  }
  0x2a   : > { %s928_s22 = sshll.u32 %s1172_s18, 8  ;;  %s187_s5 = scalar_lea.vmem [#allocation8], %s885_s20 }
  0x2b   : > { %s1313_s30 = scalar_lea.hbm %s1849_s2, %s928_s22  ;;  %s194_s7 = sshll.u32 %s187_s5, 4  ;;  %s1317_s7 = int_to_ptr.vmem [resolvable:$true] %s194_s7 }
  0x2c   : > { %s184_s10 = scalar_lea.sflag [#allocation3], %s1295_s9  ;;  %s1040_s11 = scalar_lea.hbm %s1313_s30, 256 }
  0x2d   : > { %p1041_p1 = scmp.ne.s32.totalorder %s1313_s30, %s1040_s11  ;;  %p1042_p7 = pneg %p1290_p3 }
  0x2e   : > { %s1045_s13 = scalar_lea.hbm %s1849_s2, 512  ;;  %p1046_p10 = scmp.lt.s32.totalorder %s1313_s30, %s1849_s2 }
  0x2f   : > { %p1043_p8 = pnand %p1042_p7, %p1041_p1  ;;  %p1047_p2 = scmp.lt.s32.totalorder %s1045_s13, %s1040_s11 }
  0x31   : > { %p1044_p9 = pneg %p1043_p8  ;;  %p1048_p0 = por %p1047_p2, %p1046_p10 }
  0x33   : > { %p1049_p4 = pnand %p1048_p0, %p1044_p9 }
  0x35   : > { %1052 = shalt.err (!%p1049_p4)
}
  0x36   : > { %s1053_s25 = scalar_lea.vmem %s1317_s7, 256  ;;  %s1176_s5 = smov [#allocation8]  }
  0x37   : > { %p1054_p5 = scmp.ne.s32.totalorder %s1317_s7, %s1053_s25  ;;  %s1058_s6 = sshll.u32 %s1176_s5, 4  ;;  %s1059_s6 = int_to_ptr.vmem [resolvable:$false] %s1058_s6 }
  0x38   : > { %s1060_s12 = scalar_lea.vmem %s1059_s6, 512  ;;  %p1061_p12 = scmp.lt.s32.totalorder %s1317_s7, %s1059_s6 }
  0x39   : > { %p1056_p1 = pnand %p1054_p5, %p1042_p7  ;;  %p1062_p11 = scmp.lt.s32.totalorder %s1060_s12, %s1053_s25 }
  0x3b   : > { %p1057_p8 = pneg %p1056_p1  ;;  %p1063_p6 = por %p1062_p11, %p1061_p12 }
  0x3d   : > { %p1064_p10 = pnand %p1063_p6, %p1057_p8 }
  0x3f   : > { %1067 = shalt.err (!%p1064_p10)
}
  0x40   : > { %s1177_s11 = smov 128   ;;  %s1178_s13 = smov 8  }
  0x41   : > { %955 = dma.hbm_to_vmem [thread:$0]  (!%p1290_p3), %s1313_s30, 256, %s1317_s7, %s184_s10, %s1177_s11, %s1177_s11, %s1178_s13  }
  0x42   : > { %s1354_s25 = scalar_lea.hbm %s1850_s3, %s928_s22  ;;  %s208_s5 = scalar_lea.vmem [#allocation9], %s885_s20 }
  0x43   : > { %s215_s6 = sshll.u32 %s208_s5, 4  ;;  %s205_s12 = scalar_lea.sflag [#allocation10], %s1295_s9  ;;  %s1358_s6 = int_to_ptr.vmem [resolvable:$true] %s215_s6 }
  0x44   : > { %s1068_s0 = scalar_lea.hbm %s1354_s25, 256  ;;  %s1073_s22 = scalar_lea.hbm %s1850_s3, 512 }
  0x45   : > { %p1069_p6 = scmp.ne.s32.totalorder %s1354_s25, %s1068_s0  ;;  %p1074_p9 = scmp.lt.s32.totalorder %s1354_s25, %s1850_s3 }
  0x46   : > { %p1075_p2 = scmp.lt.s32.totalorder %s1073_s22, %s1068_s0 }
  0x47   : > { %p1071_p11 = pnand %p1069_p6, %p1042_p7 }
  0x48   : > { %p1076_p0 = por %p1075_p2, %p1074_p9 }
  0x49   : > { %p1072_p12 = pneg %p1071_p11 }
  0x4b   : > { %p1077_p4 = pnand %p1076_p0, %p1072_p12 }
  0x4d   : > { %1080 = shalt.err (!%p1077_p4)
}
  0x4e   : > { %s1081_s9 = scalar_lea.vmem %s1358_s6, 256  ;;  %s1179_s20 = smov [#allocation9]  }
  0x4f   : > { %p1082_p5 = scmp.ne.s32.totalorder %s1358_s6, %s1081_s9  ;;  %s1086_s23 = sshll.u32 %s1179_s20, 4  ;;  %s1087_s23 = int_to_ptr.vmem [resolvable:$false] %s1086_s23 }
  0x50   : > { %s1088_s5 = scalar_lea.vmem %s1087_s23, 512  ;;  %p1089_p10 = scmp.lt.s32.totalorder %s1358_s6, %s1087_s23 }
  0x51   : > { %p1084_p1 = pnand %p1082_p5, %p1042_p7  ;;  %p1090_p6 = scmp.lt.s32.totalorder %s1088_s5, %s1081_s9 }
  0x53   : > { %p1085_p8 = pneg %p1084_p1  ;;  %p1091_p11 = por %p1090_p6, %p1089_p10 }
  0x55   : > { %p1092_p9 = pnand %p1091_p11, %p1085_p8 }
  0x57   : > { %1095 = shalt.err (!%p1092_p9)
}
  0x58   : > { %958 = dma.hbm_to_vmem [thread:$0]  (!%p1290_p3), %s1354_s25, 256, %s1358_s6, %s205_s12, %s1177_s11, %s1177_s11, %s1178_s13  }
  0x59   : > { %227 = sbr.rel (%p1271_p13) target bundleno = 933 (0x3a5), region = 36  ;;  %p1865_p7 = scmp.eq.s32.totalorder (!%p1271_p13), %s1232_s19, 0 }
  0x5e   : > { %1139 = dma.done.wait (%p1865_p7), [#allocation5], 64   ;;  %p1866_p12 = pmov %p1865_p7 }
  0x5f   : > { %p1867_p2 = pmov %p1865_p7 }
  0x60   : > { %1141 = vsyncadd (%p1866_p12), [#allocation5], 4294967232 }
  0x61   : > { %1143 = dma.done.wait (%p1867_p2), [#allocation6], 16   ;;  %p1868_p0 = pmov %p1867_p2 }
  0x62   : > { %s1397_s0 = sand.u32 1, %s1164_s16   ;;  %p1869_p13 = scmp.ne.s32.totalorder %s1857_s26, 0 }
  0x63   : > { %1145 = vsyncadd (%p1868_p0), [#allocation6], 4294967280  ;;  %s1400_s29 = sshll.u32 %s1397_s0, 4  ;;  %s238_s8 = scalar_lea.sflag [#allocation3], %s1397_s0 }
  0x64   : > { %s241_s11 = scalar_lea.vmem [#allocation8], %s1400_s29 }
  0x65   : > { %1147 = dma.done.wait (%p1869_p13), %s238_s8, 256  }
  0x66   : > { %1149 = vsyncadd (%p1869_p13), %s238_s8, 4294967040  ;;  %s247_s13 = scalar_lea.sflag [#allocation10], %s1397_s0  ;;  %s250_s25 = scalar_lea.vmem [#allocation9], %s1400_s29 }
  0x67   : > { %1151 = dma.done.wait (%p1869_p13), %s247_s13, 256  }
  0x68   : > { %1153 = vsyncadd (%p1869_p13), %s247_s13, 4294967040 }
  0x69   : > { %255 = sfence }
  0x6a   : > { %v1414_v0 = vld [vmem:[%s250_s25] sm:$0xff]  ;;  %v1416_v1 = vld [vmem:[%s250_s25 + $0x8] sm:$0xff]  ;;  %v285_v2 = vlaneseq  ;;  %s1180_s6 = smov 16   ;;  %vm310_vm4 = vcmask 1047680   ;;  %s1181_s26 = smov 113   ;;  %vm743_vm11 = vcmask 130048  }
  0x6b   : > { %v1418_v3 = vld [vmem:[%s241_s11] sm:$0xff]  ;;  %571 = vrot.lane.b32.xlu1 %v1414_v0, %s1180_s6  ;;  %v515_v4 = vrot.slane %v1414_v0, 1  ;;  %v516_v5 = vrot.slane %v1416_v1, 1  ;;  %v1424_v6 = vld [vmem:[%s241_s11 + $0x8] sm:$0xff]  ;;  %s1182_s12 = smov 127   ;;  %s1522_s30 = sld [smem:[#allocation2 + $0x103]] }
  0x6c   : > { %v1427_v7 = vshrl.u32 %v285_v2, 7  ;;  %v300_v8 = vrot.slane %v1418_v3, 7  ;;  %v301_v9 = vrot.slane %v1424_v6, 7  ;;  %s1524_s7 = sld [smem:[#allocation2 + $0x104]]  ;;  %v1527_v51 = vand.u32 127, %v285_v2  ;;  %p1870_p4 = scmp.ne.s32.totalorder %s1858_s27, 0 }
  0x6d   : > { %s1529_s22 = sld [smem:[#allocation2 + $0x100]] }
  0x6e   : > { %vm517_vm0 = vcmp.lt.s32.totalorder %v1427_v7, 7  ;;  %vm292_vm1 = vcmp.ge.s32.totalorder %v1427_v7, 1  ;;  %vm302_vm2 = vcmp.lt.s32.totalorder %v1427_v7, 1  ;;  %v1441_v11 = vadd.s32 8, %v1427_v7  ;;  %s1531_s10 = sld [smem:[#allocation2 + $0x101]] }
  0x6f   : > { %574 = vrot.lane.b32.xlu1 %v1416_v1, %s1180_s6  ;;  %v1437_v10 = vsel %vm517_vm0, %v515_v4, %v516_v5  ;;  %v304_v12 = vsel %vm302_vm2, %v301_v9, %v300_v8  ;;  %v1445_v13 = vsel %vm302_vm2, %v300_v8, %v301_v9  ;;  %v519_v15 = vsel %vm517_vm0, %v516_v5, %v515_v4  ;;  %s1533_s14 = sld [smem:[#allocation2 + $0x105]] }
  0x70   : > { %525 = vrot.lane.b32.xlu0 %v1437_v10, %s1180_s6  ;;  %v1447_v14 = vsel %vm292_vm1, %v304_v12, 0.0  ;;  %vm295_vm3 = vcmp.lt.s32.totalorder %v1441_v11, 15  ;;  %vm290_vm5 = vcmp.ge.s32.totalorder %v1527_v51, 1  ;;  %s1536_s9 = sld [smem:[#allocation2 + $0x102]]  ;;  %vm291_vm6 = vcmp.lt.s32.totalorder %v1527_v51, 15 }
  0x71   : > { %v1458_v16 = vsel %vm295_vm3, %v519_v15, 0.0  ;;  %s1538_s20 = sld [smem:[#allocation2 + $0x4]]  ;;  %v593_v56 = vstv %s1522_s30  ;;  %vm624_vm7 = vcmp.lt.s32.totalorder %v1427_v7, 6  ;;  %vm410_vm8 = vcmp.lt.s32.totalorder %v1427_v7, 2 }
  0x72   : > { %v596_v57 = vstv %s1524_s7  ;;  %s1544_s23 = sld [smem:[#allocation2 + $0x1]]  ;;  %vm296_vm9 = vcmp.ge.s32.totalorder %v1427_v7, 2  ;;  %vm299_vm10 = vcmp.lt.s32.totalorder %v1441_v11, 14 }
  0x73   : > { %314 = vrot.lane.b32.xlu1 %v1445_v13, %s1180_s6  ;;  %s1547_s5 = sld [smem:[#allocation2 + $0x3]]  ;;  %v547_v59 = vstv %s1529_s22  ;;  %v597_v61 = vmul.f32 %v596_v57, %v1414_v0 }
  0x74   : > { %311 = vrot.lane.b32.xlu0 %v1447_v14, %s1180_s6  ;;  %v550_v60 = vstv %s1531_s10  ;;  %s1551_s8 = sld [smem:[#allocation2]] }
  0x75   : > { %s1554_s11 = sld [smem:[#allocation7 + $0x2]]  ;;  %v609_v4 = vstv %s1533_s14  ;;  %v551_v9 = vmul.f32 %v550_v60, %v1437_v10 }
  0x76   : > { %v563_v15 = vstv %s1536_s9  ;;  %s1563_s13 = sld [smem:[#allocation2 + $0x2]] }
  0x77   : > { %360 = vrot.lane.b32.xlu1 %v1424_v6, %s1180_s6  ;;  %s1576_s25 = sld [smem:[#allocation2 + $0x5]] }
  0x78   : > { %528 = vrot.lane.b32.xlu0 %v1458_v16, %s1180_s6  ;;  %s1601_s30 = sld [smem:[#allocation7]] }
  0x79   : > { %s1711_s7 = sld [smem:[#allocation2 + $0x181]] }
  0x7a   : > { %s1713_s22 = sld [smem:[#allocation2 + $0x84]] }
  0x7b   : > { %s1715_s10 = sld [smem:[#allocation2 + $0x81]] }
  0x7c   : > { %357 = vrot.lane.b32.xlu0 %v1418_v3, %s1180_s6  ;;  %s1717_s14 = sld [smem:[#allocation2 + $0x180]] }
  0x7d   : > { %s1723_s9 = sld [smem:[#allocation2 + $0x185]] }
  0xdd   : > { %v572_v17 = vpop.permute.xlu1 %571 }
  0xde   : > { %v573_v18 = vsel %vm310_vm4, %v572_v17, %v1414_v0 }
  0xdf   : > { %577 = vrot.lane.b32.xlu0 %v573_v18, %s1180_s6 }
  0xe1   : > { %v575_v19 = vpop.permute.xlu1 %574 }
  0xe2   : > { %v526_v20 = vpop.permute.xlu0 %525  ;;  %v576_v21 = vsel %vm310_vm4, %v575_v19, %v1416_v1  ;;  %v382_v19 = vstv %s1538_s20  ;;  %s1725_s20 = sld [smem:[#allocation2 + $0x83]] }
  0xe3   : > { %579 = vrot.lane.b32.xlu1 %v576_v21, %s1180_s6  ;;  %v527_v22 = vsel %vm310_vm4, %v526_v20, %v1437_v10 }
  0xe4   : > { %531 = vrot.lane.b32.xlu0 %v527_v22, %s1180_s6  ;;  %v336_v22 = vstv %s1544_s23  ;;  %s1727_s23 = sld [smem:[#allocation2 + $0x80]] }
  0xe5   : > { %v315_v23 = vpop.permute.xlu1 %314 }
  0xe6   : > { %v312_v24 = vpop.permute.xlu0 %311  ;;  %v316_v25 = vsel %vm310_vm4, %v315_v23, %v1445_v13 }
  0xe7   : > { %v313_v26 = vsel %vm310_vm4, %v312_v24, %v1447_v14  ;;  %319 = vrot.lane.b32.xlu1 %v316_v25, %s1180_s6  ;;  %v379_v24 = vstv %s1547_s5  ;;  %s1729_s5 = sld [smem:[#allocation2 + $0x85]] }
  0xe8   : > { %317 = vrot.lane.b32.xlu0 %v313_v26, %s1180_s6 }
  0xe9   : > { %v361_v28 = vpop.permute.xlu1 %360 }
  0xea   : > { %v529_v27 = vpop.permute.xlu0 %528  ;;  %v362_v30 = vsel %vm310_vm4, %v361_v28, %v1424_v6  ;;  %v383_v28 = vmul.f32 %v382_v19, %v1418_v3 }
  0xeb   : > { %v530_v29 = vsel %vm310_vm4, %v529_v27, %v1458_v16 }
  0xec   : > { %533 = vrot.lane.b32.xlu1 %v530_v29, %s1180_s6  ;;  %v384_v29 = vmul.f32 %v382_v19, %v1424_v6 }
  0xee   : > { %v358_v31 = vpop.permute.xlu0 %357 }
  0xef   : > { %v359_v32 = vsel %vm310_vm4, %v358_v31, %v1418_v3 }
  0xf0   : > { %363 = vrot.lane.b32.xlu0 %v359_v32, %s1180_s6  ;;  %365 = vrot.lane.b32.xlu1 %v362_v30, %s1180_s6  ;;  %v333_v30 = vstv %s1551_s8  ;;  %v338_v32 = vmul.f32 %v336_v22, %v1445_v13  ;;  %s1734_s8 = sld [smem:[#allocation2 + $0x82]] }
 0x151   : > { %v578_v33 = vpop.permute.xlu0 %577 }
 0x152   : > { %v581_v34 = vsel %vm310_vm4, %v578_v33, %v1414_v0  ;;  %v617_v33 = vstv %s1554_s11  ;;  %s1753_s11 = sld [smem:[#allocation7 + $0x3]] }
 0x153   : > { %585 = vrot.lane.b32.xlu0 %v581_v34, %s1181_s26 }
 0x155   : > { %v580_v35 = vpop.permute.xlu1 %579 }
 0x156   : > { %v582_v36 = vsel %vm310_vm4, %v580_v35, %v1416_v1  ;;  %v532_v37 = vpop.permute.xlu0 %531 }
 0x157   : > { %601 = vrot.lane.b32.xlu0 %v581_v34, %s1182_s12  ;;  %587 = vrot.lane.b32.xlu1 %v582_v36, %s1181_s26  ;;  %v535_v45 = vsel %vm310_vm4, %v532_v37, %v1437_v10  ;;  %v598_v10 = vmul.f32 %v596_v57, %v1416_v1 }
 0x159   : > { %v320_v38 = vpop.permute.xlu1 %319 }
 0x15a   : > { %v318_v39 = vpop.permute.xlu0 %317  ;;  %v322_v46 = vsel %vm310_vm4, %v320_v38, %v1445_v13 }
 0x15b   : > { %603 = vrot.lane.b32.xlu1 %v582_v36, %s1182_s12  ;;  %v321_v47 = vsel %vm310_vm4, %v318_v39, %v1447_v14 }
 0x15e   : > { %v534_v40 = vpop.permute.xlu1 %533 }
 0x15f   : > { %v536_v48 = vsel %vm310_vm4, %v534_v40, %v1458_v16 }
 0x162   : > { %v364_v41 = vpop.permute.xlu0 %363  ;;  %v366_v42 = vpop.permute.xlu1 %365 }
 0x163   : > { %v367_v43 = vsel %vm310_vm4, %v364_v41, %v1418_v3  ;;  %v368_v44 = vsel %vm310_vm4, %v366_v42, %v1424_v6  ;;  %v552_v3 = vmul.f32 %v550_v60, %v1458_v16  ;;  %v349_v42 = vstv %s1563_s13  ;;  %s1773_s13 = sld [smem:[#allocation7 + $0x1]] }
 0x164   : > { %371 = vrot.lane.b32.xlu0 %v367_v43, %s1181_s26  ;;  %373 = vrot.lane.b32.xlu1 %v368_v44, %s1181_s26 }
 0x168   : > { %539 = vrot.lane.b32.xlu0 %v535_v45, %s1181_s26  ;;  %327 = vrot.lane.b32.xlu1 %v322_v46, %s1181_s26 }
 0x16c   : > { %555 = vrot.lane.b32.xlu0 %v535_v45, %s1182_s12  ;;  %343 = vrot.lane.b32.xlu1 %v322_v46, %s1182_s12 }
 0x170   : > { %325 = vrot.lane.b32.xlu0 %v321_v47, %s1181_s26  ;;  %541 = vrot.lane.b32.xlu1 %v536_v48, %s1181_s26 }
 0x174   : > { %341 = vrot.lane.b32.xlu0 %v321_v47, %s1182_s12  ;;  %557 = vrot.lane.b32.xlu1 %v536_v48, %s1182_s12 }
 0x178   : > { %387 = vrot.lane.b32.xlu0 %v367_v43, %s1182_s12  ;;  %389 = vrot.lane.b32.xlu1 %v368_v44, %s1182_s12  ;;  %v337_v44 = vmul.f32 %v336_v22, %v1447_v14 }
 0x1c5   : > { %v586_v49 = vpop.permute.xlu0 %585 }
 0x1c6   : > { %v591_v58 = vsel %vm290_vm5, %v586_v49, 0.0 }
 0x1c7   : > { %v594_v62 = vmul.f32 %v593_v56, %v591_v58 }
 0x1c9   : > { %v588_v50 = vpop.permute.xlu1 %587  ;;  %v602_v52 = vpop.permute.xlu0 %601  ;;  %v599_v0 = vadd.f32 %v597_v61, %v594_v62 }
 0x1ca   : > { %v607_v5 = vsel %vm291_vm6, %v602_v52, 0.0  ;;  %v592_v18 = vsel %vm290_vm5, %v588_v50, 0.0 }
 0x1cb   : > { %v610_v17 = vmul.f32 %v609_v4, %v607_v5  ;;  %v595_v27 = vmul.f32 %v593_v56, %v592_v18 }
 0x1cd   : > { %v604_v53 = vpop.permute.xlu1 %603  ;;  %v612_v31 = vadd.f32 %v610_v17, %v599_v0  ;;  %v600_v41 = vadd.f32 %v598_v10, %v595_v27  ;;  %v403_v10 = vstv %s1601_s30  ;;  %s280_s30 = scalar_lea.vmem [#allocation11], %s1400_s29 }
 0x1ce   : > { %v608_v1 = vsel %vm291_vm6, %v604_v53, 0.0 }
 0x1cf   : > { %v611_v45 = vmul.f32 %v609_v4, %v608_v1 }
 0x1d1   : > { %v613_v60 = vadd.f32 %v611_v45, %v600_v41 }
 0x1d6   : > { %v372_v54 = vpop.permute.xlu0 %371  ;;  %v374_v55 = vpop.permute.xlu1 %373 }
 0x1d7   : > { %v377_v37 = vsel %vm290_vm5, %v372_v54, 0.0  ;;  %v378_v38 = vsel %vm290_vm5, %v374_v55, 0.0 }
 0x1d8   : > { %v380_v16 = vmul.f32 %v379_v24, %v377_v37  ;;  %v381_v50 = vmul.f32 %v379_v24, %v378_v38 }
 0x1da   : > { %v540_v63 = vpop.permute.xlu0 %539  ;;  %v328_v2 = vpop.permute.xlu1 %327  ;;  %v385_v61 = vadd.f32 %v383_v28, %v380_v16  ;;  %v386_v5 = vadd.f32 %v384_v29, %v381_v50 }
 0x1db   : > { %v545_v8 = vsel %vm290_vm5, %v540_v63, 0.0  ;;  %v332_v13 = vsel %vm290_vm5, %v328_v2, 0.0 }
 0x1dc   : > { %v548_v12 = vmul.f32 %v547_v59, %v545_v8  ;;  %v335_v52 = vmul.f32 %v333_v30, %v332_v13 }
 0x1de   : > { %v556_v20 = vpop.permute.xlu0 %555  ;;  %v344_v21 = vpop.permute.xlu1 %343  ;;  %v553_v25 = vadd.f32 %v551_v9, %v548_v12  ;;  %v340_v8 = vadd.f32 %v338_v32, %v335_v52 }
 0x1df   : > { %v561_v23 = vsel %vm291_vm6, %v556_v20, 0.0  ;;  %v348_v47 = vsel %vm291_vm6, %v344_v21, 0.0 }
 0x1e0   : > { %v564_v26 = vmul.f32 %v563_v15, %v561_v23  ;;  %v351_v58 = vmul.f32 %v349_v42, %v348_v47 }
 0x1e2   : > { %v566_v34 = vadd.f32 %v564_v26, %v553_v25  ;;  %v326_v35 = vpop.permute.xlu0 %325  ;;  %v542_v36 = vpop.permute.xlu1 %541  ;;  %v353_v19 = vadd.f32 %v351_v58, %v340_v8 }
 0x1e3   : > { %v546_v6 = vsel %vm290_vm5, %v542_v36, 0.0  ;;  %v331_v43 = vsel %vm290_vm5, %v326_v35, 0.0 }
 0x1e4   : > { %v614_v39 = vadd.f32 %v612_v31, %v566_v34  ;;  %v549_v40 = vmul.f32 %v547_v59, %v546_v6  ;;  %v334_v55 = vmul.f32 %v333_v30, %v331_v43  ;;  %v395_v59 = vstv %s1576_s25  ;;  %s930_s25 = sshll.u32 %s1232_s19, 8  ;;  %s747_s19 = scalar_lea.sflag [#allocation4], %s1397_s0 }
 0x1e6   : > { %v618_v46 = vadd.f32 %v617_v33, %v614_v39  ;;  %v342_v48 = vpop.permute.xlu0 %341  ;;  %v558_v49 = vpop.permute.xlu1 %557  ;;  %v554_v56 = vadd.f32 %v552_v3, %v549_v40 }
 0x1e7   : > { %v347_v53 = vsel %vm291_vm6, %v342_v48, 0.0  ;;  %v562_v54 = vsel %vm291_vm6, %v558_v49, 0.0 }
 0x1e8   : > { %v1603_v14 = vmax.f32 %v618_v46, 0.0  ;;  %v565_v57 = vmul.f32 %v563_v15, %v562_v54  ;;  %v350_v62 = vmul.f32 %v349_v42, %v347_v53  ;;  %v339_v15 = vadd.f32 %v337_v44, %v334_v55 }
 0x1ea   : > { %v567_v63 = vadd.f32 %v565_v57, %v554_v56  ;;  %678 = vrot.lane.b32.xlu0 %v1603_v14, %s1180_s6  ;;  %v388_v2 = vpop.permute.xlu0 %387  ;;  %v390_v4 = vpop.permute.xlu1 %389  ;;  %v352_v20 = vadd.f32 %v350_v62, %v339_v15  ;;  %v622_v29 = vrot.slane %v1603_v14, 2 }
 0x1eb   : > { %v393_v9 = vsel %vm291_vm6, %v388_v2, 0.0  ;;  %v394_v12 = vsel %vm291_vm6, %v390_v4, 0.0 }
 0x1ec   : > { %v615_v0 = vadd.f32 %v613_v60, %v567_v63  ;;  %v396_v17 = vmul.f32 %v395_v59, %v393_v9  ;;  %v397_v18 = vmul.f32 %v395_v59, %v394_v12 }
 0x1ee   : > { %v619_v21 = vadd.f32 %v617_v33, %v615_v0  ;;  %v398_v22 = vadd.f32 %v396_v17, %v385_v61  ;;  %v399_v23 = vadd.f32 %v397_v18, %v386_v5 }
 0x1f0   : > { %v1613_v24 = vmax.f32 %v619_v21, 0.0  ;;  %v400_v25 = vadd.f32 %v398_v22, %v352_v20  ;;  %v401_v26 = vadd.f32 %v399_v23, %v353_v19  ;;  %v654_v23 = vstv %s1717_s14  ;;  %s1183_s14 = smov [#allocation11]  }
 0x1f2   : > { %v404_v27 = vadd.f32 %v403_v10, %v400_v25  ;;  %v405_v28 = vadd.f32 %v403_v10, %v401_v26  ;;  %681 = vrot.lane.b32.xlu1 %v1613_v24, %s1180_s6  ;;  %v623_v30 = vrot.slane %v1613_v24, 2  ;;  %v657_v25 = vstv %s1711_s7 }
 0x1f4   : > { %v1620_v31 = vmax.f32 %v404_v27, 0.0  ;;  %v1622_v32 = vmax.f32 %v405_v28, 0.0  ;;  %v1626_v33 = vsel %vm624_vm7, %v622_v29, %v623_v30  ;;  %v626_v3 = vsel %vm624_vm7, %v623_v30, %v622_v29 }
 0x1f5   : > { %632 = vrot.lane.b32.xlu0 %v1626_v33, %s1180_s6  ;;  %v1645_v6 = vsel %vm299_vm10, %v626_v3, 0.0 }
 0x1f6   : > { %v408_v34 = vrot.slane %v1620_v31, 6  ;;  %v409_v35 = vrot.slane %v1622_v32, 6 }
 0x1f8   : > { %v1634_v36 = vsel %vm410_vm8, %v408_v34, %v409_v35  ;;  %v412_v1 = vsel %vm410_vm8, %v409_v35, %v408_v34 }
 0x1f9   : > { %421 = vrot.lane.b32.xlu1 %v1634_v36, %s1180_s6  ;;  %v1638_v37 = vsel %vm296_vm9, %v412_v1, 0.0  ;;  %v489_v1 = vstv %s1713_s22 }
 0x1fa   : > { %418 = vrot.lane.b32.xlu0 %v1638_v37, %s1180_s6 }
 0x1fd   : > { %635 = vrot.lane.b32.xlu1 %v1645_v6, %s1180_s6 }
 0x1fe   : > { %464 = vrot.lane.b32.xlu0 %v1620_v31, %s1180_s6 }
 0x201   : > { %467 = vrot.lane.b32.xlu1 %v1622_v32, %s1180_s6 }
 0x25c   : > { %v679_v38 = vpop.permute.xlu0 %678 }
 0x25d   : > { %v680_v13 = vsel %vm310_vm4, %v679_v38, %v1603_v14  ;;  %v716_v38 = vstv %s1723_s9 }
 0x25e   : > { %684 = vrot.lane.b32.xlu0 %v680_v13, %s1180_s6 }
 0x264   : > { %v682_v39 = vpop.permute.xlu1 %681 }
 0x265   : > { %v683_v40 = vsel %vm310_vm4, %v682_v39, %v1613_v24  ;;  %v658_v39 = vmul.f32 %v657_v25, %v1626_v33 }
 0x266   : > { %686 = vrot.lane.b32.xlu1 %v683_v40, %s1180_s6  ;;  %v443_v40 = vstv %s1715_s10  ;;  %s1802_s10 = scalar_lea.hbm %s1851_s4, %s930_s25 }
 0x267   : > { %v633_v41 = vpop.permute.xlu0 %632 }
 0x268   : > { %v634_v42 = vsel %vm310_vm4, %v633_v41, %v1626_v33 }
 0x269   : > { %638 = vrot.lane.b32.xlu0 %v634_v42, %s1180_s6  ;;  %v486_v42 = vstv %s1725_s20 }
 0x26b   : > { %v422_v43 = vpop.permute.xlu1 %421 }
 0x26c   : > { %v419_v44 = vpop.permute.xlu0 %418  ;;  %v423_v45 = vsel %vm310_vm4, %v422_v43, %v1634_v36 }
 0x26d   : > { %426 = vrot.lane.b32.xlu1 %v423_v45, %s1180_s6  ;;  %v420_v16 = vsel %vm310_vm4, %v419_v44, %v1638_v37 }
 0x26e   : > { %424 = vrot.lane.b32.xlu0 %v420_v16, %s1180_s6 }
 0x26f   : > { %v636_v46 = vpop.permute.xlu1 %635 }
 0x270   : > { %v465_v47 = vpop.permute.xlu0 %464  ;;  %v637_v48 = vsel %vm310_vm4, %v636_v46, %v1645_v6 }
 0x271   : > { %640 = vrot.lane.b32.xlu1 %v637_v48, %s1180_s6  ;;  %v466_v49 = vsel %vm310_vm4, %v465_v47, %v1620_v31  ;;  %v440_v47 = vstv %s1727_s23  ;;  %v502_v48 = vstv %s1729_s5 }
 0x272   : > { %470 = vrot.lane.b32.xlu0 %v466_v49, %s1180_s6 }
 0x273   : > { %v468_v50 = vpop.permute.xlu1 %467 }
 0x274   : > { %v469_v52 = vsel %vm310_vm4, %v468_v50, %v1622_v32 }
 0x275   : > { %472 = vrot.lane.b32.xlu1 %v469_v52, %s1180_s6  ;;  %s1709_s6 = sld [smem:[#allocation2 + $0x184]] }
 0x27b   : > { %v703_v35 = vstv %s1709_s6  ;;  %s760_s6 = sshll.u32 %s280_s30, 4  ;;  %s1804_s6 = int_to_ptr.vmem [resolvable:$true] %s760_s6 }
 0x27c   : > { %v704_v16 = vmul.f32 %v703_v35, %v1603_v14  ;;  %v705_v46 = vmul.f32 %v703_v35, %v1613_v24  ;;  %s1096_s29 = scalar_lea.vmem %s1804_s6, 256 }
 0x27d   : > { %p1097_p3 = scmp.ne.s32.totalorder %s1804_s6, %s1096_s29 }
 0x27f   : > { %p1098_p5 = pnand %p1097_p3, %p1870_p4 }
 0x281   : > { %p1099_p1 = pneg %p1098_p5 }
 0x2d0   : > { %v685_v53 = vpop.permute.xlu0 %684 }
 0x2d1   : > { %v688_v54 = vsel %vm310_vm4, %v685_v53, %v1603_v14  ;;  %v456_v14 = vstv %s1734_s8 }
 0x2d2   : > { %692 = vrot.lane.b32.xlu0 %v688_v54, %s1181_s26 }
 0x2d6   : > { %708 = vrot.lane.b32.xlu0 %v688_v54, %s1182_s12  ;;  %v490_v54 = vmul.f32 %v489_v1, %v1620_v31 }
 0x2d8   : > { %v687_v55 = vpop.permute.xlu1 %686 }
 0x2d9   : > { %v689_v4 = vsel %vm310_vm4, %v687_v55, %v1613_v24 }
 0x2db   : > { %v639_v56 = vpop.permute.xlu0 %638 }
 0x2dc   : > { %v642_v2 = vsel %vm310_vm4, %v639_v56, %v1626_v33 }
 0x2df   : > { %v427_v57 = vpop.permute.xlu1 %426 }
 0x2e0   : > { %v425_v58 = vpop.permute.xlu0 %424  ;;  %v429_v8 = vsel %vm310_vm4, %v427_v57, %v1634_v36 }
 0x2e1   : > { %v428_v5 = vsel %vm310_vm4, %v425_v58, %v1638_v37 }
 0x2e3   : > { %v641_v59 = vpop.permute.xlu1 %640 }
 0x2e4   : > { %v471_v60 = vpop.permute.xlu0 %470  ;;  %v643_v9 = vsel %vm310_vm4, %v641_v59, %v1645_v6 }
 0x2e5   : > { %v474_v61 = vsel %vm310_vm4, %v471_v60, %v1620_v31 }
 0x2e6   : > { %478 = vrot.lane.b32.xlu0 %v474_v61, %s1181_s26 }
 0x2e7   : > { %v473_v62 = vpop.permute.xlu1 %472 }
 0x2e8   : > { %v475_v63 = vsel %vm310_vm4, %v473_v62, %v1622_v32 }
 0x2e9   : > { %480 = vrot.lane.b32.xlu1 %v475_v63, %s1181_s26 }
 0x2ea   : > { %646 = vrot.lane.b32.xlu0 %v642_v2, %s1181_s26 }
 0x2ed   : > { %694 = vrot.lane.b32.xlu1 %v689_v4, %s1181_s26 }
 0x2ee   : > { %662 = vrot.lane.b32.xlu0 %v642_v2, %s1182_s12 }
 0x2f1   : > { %710 = vrot.lane.b32.xlu1 %v689_v4, %s1182_s12 }
 0x2f2   : > { %432 = vrot.lane.b32.xlu0 %v428_v5, %s1181_s26 }
 0x2f5   : > { %434 = vrot.lane.b32.xlu1 %v429_v8, %s1181_s26 }
 0x2f6   : > { %448 = vrot.lane.b32.xlu0 %v428_v5, %s1182_s12  ;;  %v659_v5 = vmul.f32 %v657_v25, %v1645_v6 }
 0x2f9   : > { %450 = vrot.lane.b32.xlu1 %v429_v8, %s1182_s12 }
 0x2fa   : > { %494 = vrot.lane.b32.xlu0 %v474_v61, %s1182_s12 }
 0x2fd   : > { %648 = vrot.lane.b32.xlu1 %v643_v9, %s1181_s26  ;;  %s1719_s26 = sld [smem:[#allocation2 + $0x183]] }
 0x301   : > { %664 = vrot.lane.b32.xlu1 %v643_v9, %s1182_s12 }
 0x303   : > { %v700_v27 = vstv %s1719_s26  ;;  %s1100_s26 = sshll.u32 %s1183_s14, 4  ;;  %s1101_s26 = int_to_ptr.vmem [resolvable:$false] %s1100_s26 }
 0x304   : > { %p1103_p8 = scmp.lt.s32.totalorder %s1804_s6, %s1101_s26 }
 0x305   : > { %496 = vrot.lane.b32.xlu1 %v475_v63, %s1182_s12  ;;  %s1721_s12 = sld [smem:[#allocation2 + $0x182]] }
 0x30b   : > { %v670_v29 = vstv %s1721_s12  ;;  %s1102_s12 = scalar_lea.vmem %s1101_s26, 512 }
 0x30c   : > { %p1104_p10 = scmp.lt.s32.totalorder %s1102_s12, %s1096_s29 }
 0x30e   : > { %p1105_p6 = por %p1104_p10, %p1103_p8 }
 0x310   : > { %p1106_p11 = pnand %p1105_p6, %p1099_p1 }
 0x344   : > { %v693_v12 = vpop.permute.xlu0 %692 }
 0x345   : > { %v698_v28 = vsel %vm290_vm5, %v693_v12, 0.0  ;;  %v444_v12 = vmul.f32 %v443_v40, %v1638_v37 }
 0x346   : > { %v701_v41 = vmul.f32 %v700_v27, %v698_v28 }
 0x348   : > { %v709_v15 = vpop.permute.xlu0 %708  ;;  %v706_v57 = vadd.f32 %v704_v16, %v701_v41  ;;  %v510_v41 = vstv %s1773_s13 }
 0x349   : > { %v714_v13 = vsel %vm291_vm6, %v709_v15, 0.0 }
 0x34a   : > { %v717_v50 = vmul.f32 %v716_v38, %v714_v13 }
 0x34c   : > { %v719_v2 = vadd.f32 %v717_v50, %v706_v57 }
 0x358   : > { %v479_v0 = vpop.permute.xlu0 %478 }
 0x359   : > { %v484_v43 = vsel %vm290_vm5, %v479_v0, 0.0 }
 0x35a   : > { %v487_v55 = vmul.f32 %v486_v42, %v484_v43 }
 0x35b   : > { %v481_v17 = vpop.permute.xlu1 %480 }
 0x35c   : > { %v647_v18 = vpop.permute.xlu0 %646  ;;  %v485_v24 = vsel %vm290_vm5, %v481_v17, 0.0  ;;  %v492_v9 = vadd.f32 %v490_v54, %v487_v55 }
 0x35d   : > { %v652_v10 = vsel %vm290_vm5, %v647_v18, 0.0  ;;  %v488_v17 = vmul.f32 %v486_v42, %v485_v24  ;;  %v724_v18 = vstv %s1753_s11 }
 0x35e   : > { %v655_v3 = vmul.f32 %v654_v23, %v652_v10 }
 0x35f   : > { %v695_v19 = vpop.permute.xlu1 %694 }
 0x360   : > { %v663_v20 = vpop.permute.xlu0 %662  ;;  %v660_v33 = vadd.f32 %v658_v39, %v655_v3  ;;  %v699_v56 = vsel %vm290_vm5, %v695_v19, 0.0 }
 0x361   : > { %v668_v30 = vsel %vm291_vm6, %v663_v20, 0.0  ;;  %v702_v4 = vmul.f32 %v700_v27, %v699_v56 }
 0x362   : > { %v671_v44 = vmul.f32 %v670_v29, %v668_v30  ;;  %v445_v30 = vmul.f32 %v443_v40, %v1634_v36 }
 0x363   : > { %v711_v21 = vpop.permute.xlu1 %710 }
 0x364   : > { %v433_v22 = vpop.permute.xlu0 %432  ;;  %v673_v58 = vadd.f32 %v671_v44, %v660_v33  ;;  %v715_v61 = vsel %vm291_vm6, %v711_v21, 0.0 }
 0x365   : > { %v438_v52 = vsel %vm290_vm5, %v433_v22, 0.0  ;;  %v718_v20 = vmul.f32 %v716_v38, %v715_v61 }
 0x366   : > { %v441_v62 = vmul.f32 %v440_v47, %v438_v52  ;;  %v721_v19 = vadd.f32 %v719_v2, %v673_v58 }
 0x367   : > { %v435_v26 = vpop.permute.xlu1 %434 }
 0x368   : > { %v449_v34 = vpop.permute.xlu0 %448  ;;  %v439_v15 = vsel %vm290_vm5, %v435_v26, 0.0  ;;  %v446_v22 = vadd.f32 %v444_v12, %v441_v62  ;;  %v491_v26 = vmul.f32 %v489_v1, %v1622_v32  ;;  %v725_v35 = vadd.f32 %v724_v18, %v721_v19 }
 0x369   : > { %v454_v59 = vsel %vm291_vm6, %v449_v34, 0.0  ;;  %v442_v37 = vmul.f32 %v440_v47, %v439_v15 }
 0x36a   : > { %v457_v0 = vmul.f32 %v456_v14, %v454_v59  ;;  %v493_v44 = vadd.f32 %v491_v26, %v488_v17 }
 0x36b   : > { %v451_v45 = vpop.permute.xlu1 %450 }
 0x36c   : > { %v495_v49 = vpop.permute.xlu0 %494  ;;  %v455_v10 = vsel %vm291_vm6, %v451_v45, 0.0  ;;  %v459_v34 = vadd.f32 %v457_v0, %v446_v22  ;;  %v447_v45 = vadd.f32 %v445_v30, %v442_v37 }
 0x36d   : > { %v500_v53 = vsel %vm291_vm6, %v495_v49, 0.0  ;;  %v458_v38 = vmul.f32 %v456_v14, %v455_v10 }
 0x36e   : > { %v503_v31 = vmul.f32 %v502_v48, %v500_v53 }
 0x36f   : > { %v649_v60 = vpop.permute.xlu1 %648  ;;  %v460_v47 = vadd.f32 %v458_v38, %v447_v45 }
 0x370   : > { %v653_v63 = vsel %vm290_vm5, %v649_v60, 0.0  ;;  %v505_v27 = vadd.f32 %v503_v31, %v492_v9 }
 0x371   : > { %v656_v8 = vmul.f32 %v654_v23, %v653_v63  ;;  %v707_v23 = vadd.f32 %v705_v46, %v702_v4 }
 0x372   : > { %v507_v42 = vadd.f32 %v505_v27, %v459_v34 }
 0x373   : > { %v665_v21 = vpop.permute.xlu1 %664  ;;  %v661_v25 = vadd.f32 %v659_v5, %v656_v8  ;;  %v720_v3 = vadd.f32 %v718_v20, %v707_v23 }
 0x374   : > { %v669_v6 = vsel %vm291_vm6, %v665_v21, 0.0  ;;  %v511_v36 = vadd.f32 %v510_v41, %v507_v42 }
 0x375   : > { %v672_v28 = vmul.f32 %v670_v29, %v669_v6  ;;  %v727_v29 = vmax.f32 %v725_v35, 0.0 }
 0x376   : > { %v513_v53 = vmax.f32 %v511_v36, 0.0 }
 0x377   : > { %v674_v13 = vadd.f32 %v672_v28, %v661_v25  ;;  %v497_v39 = vpop.permute.xlu1 %496  ;;  %v729_v50 = vrot.slane %v727_v29, 1 }
 0x378   : > { %v501_v43 = vsel %vm291_vm6, %v497_v39, 0.0 }
 0x379   : > { %v722_v16 = vadd.f32 %v720_v3, %v674_v13  ;;  %v504_v46 = vmul.f32 %v502_v48, %v501_v43 }
 0x37b   : > { %v726_v32 = vadd.f32 %v724_v18, %v722_v16  ;;  %v506_v1 = vadd.f32 %v504_v46, %v493_v44 }
 0x37d   : > { %v728_v40 = vmax.f32 %v726_v32, 0.0  ;;  %v508_v49 = vadd.f32 %v506_v1, %v460_v47 }
 0x37f   : > { %v730_v33 = vrot.slane %v728_v40, 1  ;;  %v512_v52 = vadd.f32 %v510_v41, %v508_v49 }
 0x381   : > { %v731_v51 = vsel %vm517_vm0, %v729_v50, %v730_v33  ;;  %v732_v54 = vsel %vm517_vm0, %v730_v33, %v729_v50  ;;  %v514_v48 = vmax.f32 %v512_v52, 0.0 }
 0x382   : > { %v735_v55 = vadd.f32 %v731_v51, %v513_v53  ;;  %v734_v56 = vsel %vm295_vm3, %v732_v54, 0.0 }
 0x383   : > { %v736_v14 = vadd.f32 %v734_v56, %v514_v48 }
 0x384   : > { %1010 = vtanh.f32 %v735_v55 }
 0x385   : > { %1012 = vtanh.f32 %v736_v14 }
 0x391   : > { %v1011_v57 = vpop.eup %1010 }
 0x392   : > { %v1013_v24 = vpop.eup %1012  ;;  %v739_v58 = vadd.f32 1.0, %v1011_v57 }
 0x393   : > { %v740_v59 = vadd.f32 1.0, %v1013_v24 }
 0x394   : > { %v741_v7 = vmul.f32 0.5, %v739_v58 }
 0x395   : > { %v742_v11 = vmul.f32 0.5, %v740_v59 }
 0x396   : > { %744 = vst.msk [vmem:[%s280_s30] sm:$0xff] %vm743_vm11, %v741_v7 }
 0x397   : > { %745 = vst.msk [vmem:[%s280_s30 + $0x8] sm:$0xff] %vm743_vm11, %v742_v11 }
 0x398   : > { %1109 = shalt.err (!%p1106_p11)
}
 0x399   : > { %s1110_s9 = scalar_lea.hbm %s1802_s10, 256  ;;  %s1114_s5 = scalar_lea.hbm %s1851_s4, 512 }
 0x39a   : > { %p1111_p9 = scmp.ne.s32.totalorder %s1802_s10, %s1110_s9  ;;  %p1115_p2 = scmp.lt.s32.totalorder %s1802_s10, %s1851_s4 }
 0x39b   : > { %p1116_p0 = scmp.lt.s32.totalorder %s1114_s5, %s1110_s9 }
 0x39c   : > { %p1112_p7 = pnand %p1111_p9, %p1870_p4 }
 0x39d   : > { %p1117_p13 = por %p1116_p0, %p1115_p2 }
 0x39e   : > { %p1113_p12 = pneg %p1112_p7 }
 0x3a0   : > { %p1118_p3 = pnand %p1117_p13, %p1113_p12 }
 0x3a2   : > { %1121 = shalt.err (!%p1118_p3)
}
 0x3a3   : > { %s1184_s13 = smov 128   ;;  %s1185_s25 = smov 8  }
 0x3a4   : > { %943 = dma.vmem_to_hbm [thread:$0]  (%p1870_p4), %s1804_s6, 256, %s1802_s10, %s747_s19, %s1184_s13, %s1184_s13, %s1185_s25  }
 0x3a5 PF: > { %s775_s30 = sand.u32 1, %s1160_s15   ;;  %p1871_p5 = scmp.ne.s32.totalorder %s1859_s28, 0 }
 0x3a6   : > { %p1872_p1 = scmp.ge.s32.totalorder %s1172_s18, 2  ;;  %s776_s7 = scalar_lea.sflag [#allocation4], %s775_s30 }
 0x3a8   : > { %p960_p8 = pnand %p1872_p1, %p1871_p5 }
 0x3aa   : > { %p961_p10 = pneg %p960_p8 }
 0x3ac   : > { %1155 = dma.done.wait (%p961_p10), %s776_s7, 256  }
 0x3ad   : > { %1157 = vsyncadd (%p961_p10), %s776_s7, 4294967040  ;;  %p22_p6 = scmp.ge.s32.totalorder %s1236_s21, 4   ;;  %s1873_s15 = smov %s1164_s16 }
 0x3ae   : > { %s1874_s16 = smov %s1168_s17  ;;  %s1875_s17 = smov %s1248_s24 }
 0x3af   : > { %s1876_s18 = smov %s1236_s21  ;;  %24 = sbr.rel (!%p22_p6) target bundleno = 11 (0xb), region = 104 }
 0x3b4   :  { %781 = vsyncpa [#allocation3], 1 }
 0x3b5   :  { %783 = vsyncpa [#allocation3 + $0x1], 1 }
 0x3b6   :  { %784 = vsyncpa [#allocation10], 1 }
 0x3b7   :  { %786 = vsyncpa [#allocation10 + $0x1], 1 }
 0x3b8   :  { %787 = vsyncpa [#allocation4], 1 }
 0x3b9   :  { %789 = vsyncpa [#allocation4 + $0x1], 1 }
 0x3ba   :  { %790 = vsyncpa [#allocation5], 1 }
 0x3bb   :  { %792 = vsyncpa [#allocation5 + $0x1], 1 }
 0x3bc   :  { %793 = vsyncpa [#allocation6], 1 }
 0x3bd   :  { %795 = vsyncpa [#allocation6 + $0x1], 1 }

</bundles_post_ra>
